<compile_context>
chip_gen: v5e
topology: v5e:2x2
jax: 0.10.0
libtpu: 0.0.40
codegen_flags: <defaults>
</compile_context>

<pallas_src>
import numpy as np

import jax
import jax.numpy as jnp
from jax.experimental import pallas as pl
from jax.experimental.pallas import tpu as pltpu


def _round_up(a, b):
    return (a + b - 1) // b * b


def nnconv_kernel(tile_node_ref, first_ref, last_ref,
                  kron_ref, w_ref, dstl_ref, invdeg_ref, bias_ref, out_ref):
    """One grid step = one edge tile belonging to a single dst-node tile."""
    del tile_node_ref                       # only used by the index_maps
    t = pl.program_id(0)

    tile_n = out_ref.shape[0]
    tile_e = kron_ref.shape[0]

    # Per-edge messages: ONE MXU matmul (kron fusion), K = DEP*IN, f32 accumulate.
    msg = jnp.dot(kron_ref[...], w_ref[...],
                  preferred_element_type=jnp.float32)            # [TE, OUT_P] f32

    # In-kernel scatter: 0/1 mask (node-within-tile x edge), bf16 on the MXU with
    # f32 accumulation.  Padding edges carry dst_local = -1 -> all-zero column.
    rows = jax.lax.broadcasted_iota(jnp.int32, (tile_n, tile_e), 0)
    mask = (rows == dstl_ref[...]).astype(jnp.bfloat16)          # [TN, TE]
    neigh = jnp.dot(mask, msg.astype(jnp.bfloat16),
                    preferred_element_type=jnp.float32)          # [TN, OUT_P] f32

    is_first = first_ref[t]
    is_last = last_ref[t]

    @pl.when(is_first == 1)
    def _init():
        out_ref[...] = neigh

    @pl.when(is_first == 0)
    def _accumulate():
        out_ref[...] = out_ref[...] + neigh

    # Deferred exact mean: scale by f32 1/in_degree and add bias once, at the
    # node tile's last edge tile.
    @pl.when(is_last == 1)
    def _finalize():
        out_ref[...] = out_ref[...] * invdeg_ref[...] + bias_ref[...]


def _build_schedule(src, dst, num_nodes, tile_n, tile_e):
    """Sort edges by dst, group them by dst-node tile, pad each group to whole
    edge tiles (every node tile gets >= 1 edge tile so its output block is always
    written and finalized).  Pure graph preprocessing (numpy)."""
    src = np.asarray(src)
    dst = np.asarray(dst)
    num_edges = dst.shape[0]
    n_ntiles = -(-num_nodes // tile_n)

    order = np.argsort(dst, kind="stable")
    dst_s = dst[order]
    src_s = src[order]

    edge_ntile = dst_s // tile_n
    counts = np.bincount(edge_ntile, minlength=n_ntiles)          # edges per node tile
    tiles_per = np.maximum(1, -(-counts // tile_e))               # edge tiles per node tile
    tile_off = np.concatenate([[0], np.cumsum(tiles_per)])        # edge-tile offsets
    n_etiles = int(tile_off[-1])
    e_pad = n_etiles * tile_e

    grp_start = np.concatenate([[0], np.cumsum(counts)[:-1]])
    intra = np.arange(num_edges) - grp_start[edge_ntile]          # rank within its group
    slot = tile_off[edge_ntile] * tile_e + intra                  # position in padded order

    tile_node = np.repeat(np.arange(n_ntiles), tiles_per).astype(np.int32)
    first_flag = np.zeros((n_etiles,), np.int32)
    first_flag[tile_off[:-1]] = 1
    last_flag = np.zeros((n_etiles,), np.int32)
    last_flag[tile_off[1:] - 1] = 1

    return (order, slot, src_s, dst_s, e_pad, n_etiles, tile_node,
            first_flag, last_flag, n_ntiles)


def nnconv_forward(x, efeat, src, dst, num_nodes, w_ef, b_ef, bias, out_feats,
                   *, tile_n=8, tile_e=128, vmem_limit_bytes=None):
    """x: [N, IN] node feats, efeat: [E, De] edge feats, src/dst: [E] int32.

    Production tiling: raise tile_e to 512-1024 and scale tile_n jointly so that
    tile_n * avg_in_degree ~= tile_e (amortizes the ~0.35 us per-grid-step
    overhead without blowing up zero padding); pass vmem_limit_bytes explicitly
    (64-100 MiB on v5e/v6e; keep headroom under v7x's 64 MiB physical VMEM).
    """
    x = jnp.asarray(x, jnp.float32)
    efeat = jnp.asarray(efeat, jnp.float32)

    num_edges, de = efeat.shape
    in_feats = x.shape[1]
    out_p = _round_up(out_feats, 128)      # lane-dense output store (unmasked vst)
    dep = de + 1                           # +1 column folds edge_func bias into the matmul

    (order, slot, src_s, dst_s, e_pad, n_etiles, tile_node, first_flag,
     last_flag, n_ntiles) = _build_schedule(src, dst, num_nodes, tile_n, tile_e)
    n_pad = n_ntiles * tile_n

    # ---------------- wrapper-side graph preprocessing (plain numpy) ----------------
    deg = np.bincount(np.asarray(dst), minlength=num_nodes).astype(np.float32)
    inv_deg = np.where(deg > 0, 1.0 / np.maximum(deg, 1.0), 0.0).astype(np.float32)
    inv_deg_p = np.zeros((n_pad, 1), np.float32)                  # exact f32 mean scale
    inv_deg_p[:num_nodes, 0] = inv_deg

    efeat_np = np.asarray(efeat)
    efeat_p = np.zeros((e_pad, dep), np.float32)
    efeat_p[slot, :de] = efeat_np[order]
    efeat_p[slot, de] = 1.0                # ones column -> edge_func bias via the matmul

    src_p = np.zeros((e_pad,), np.int32)   # padding edges gather node 0 (masked out)
    src_p[slot] = src_s

    dst_local = np.full((1, e_pad), -1, np.int32)   # -1 => padding edge (no scatter row)
    dst_local[0, slot] = (dst_s % tile_n).astype(np.int32)

    # Kron-fusion input: kron_e = vec(efeat_aug_e (x) x_src_e)  [E_pad, DEP*IN] bf16.
    # TODO(synk): fuse the x[src] row gather + kron build into the kernel (manual
    # double-buffered DMA gather) instead of materializing it via an XLA gather.
    x_src = x[jnp.asarray(src_p)]                                      # [E_pad, IN]
    kron = jnp.asarray(efeat_p)[:, :, None] * x_src[:, None, :]        # [E_pad, DEP, IN]
    kron_b = kron.reshape(e_pad, dep * in_feats).astype(jnp.bfloat16)

    # Weight for the fused matmul: [DEP*IN, OUT_P] (edge_func bias row folded in,
    # OUT zero-padded to 128 lanes so the store and all slices are lane-aligned).
    w_aug = jnp.concatenate([jnp.asarray(w_ef, jnp.float32),
                             jnp.asarray(b_ef, jnp.float32).reshape(1, -1)], axis=0)
    w_aug = w_aug.reshape(dep, in_feats, out_feats)
    w_aug = jnp.pad(w_aug, ((0, 0), (0, 0), (0, out_p - out_feats)))
    w_kron = w_aug.reshape(dep * in_feats, out_p).astype(jnp.bfloat16)

    bias_p = jnp.pad(jnp.asarray(bias, jnp.float32).reshape(1, out_feats),
                     ((0, 0), (0, out_p - out_feats)))                 # [1, OUT_P]

    tile_node_j = jnp.asarray(tile_node)
    first_j = jnp.asarray(first_flag)
    last_j = jnp.asarray(last_flag)
    dst_local_j = jnp.asarray(dst_local)
    inv_deg_j = jnp.asarray(inv_deg_p)

    grid_spec = pltpu.PrefetchScalarGridSpec(
        num_scalar_prefetch=3,
        grid=(n_etiles,),
        in_specs=[
            # per-edge-tile streams (double-buffered by the pipeline)
            pl.BlockSpec((tile_e, dep * in_feats), lambda t, tn, ff, lf: (t, 0)),
            # grid-invariant weight: constant index -> single buffer
            pl.BlockSpec((dep * in_feats, out_p), lambda t, tn, ff, lf: (0, 0),
                         pipeline_mode=pl.Buffered(1)),
            pl.BlockSpec((1, tile_e), lambda t, tn, ff, lf: (0, t)),      # dst-local idx
            pl.BlockSpec((tile_n, 1), lambda t, tn, ff, lf: (tn[t], 0)),  # 1/in_degree
            pl.BlockSpec((1, out_p), lambda t, tn, ff, lf: (0, 0),
                         pipeline_mode=pl.Buffered(1)),                   # NNConv bias
        ],
        # Data-dependent output block (node tile owning edge tile t); the block
        # index is constant over that node tile's contiguous run of edge tiles, so
        # the output block stays VMEM-resident and acts as the accumulator.
        out_specs=pl.BlockSpec((tile_n, out_p), lambda t, tn, ff, lf: (tn[t], 0)),
    )

    out_padded = pl.pallas_call(
        nnconv_kernel,
        out_shape=jax.ShapeDtypeStruct((n_pad, out_p), jnp.float32),
        grid_spec=grid_spec,
        compiler_params=pltpu.CompilerParams(
            # Revolving-accumulator reduction axis.
            # TODO(synk): on v7x add a leading size-2 "parallel" grid axis (split
            # node tiles into two contiguous halves) so the 2nd TensorCore is used.
            dimension_semantics=("arbitrary",),
            vmem_limit_bytes=vmem_limit_bytes,
        ),
    )(tile_node_j, first_j, last_j, kron_b, w_kron, dst_local_j, inv_deg_j, bias_p)

    return out_padded[:num_nodes, :out_feats]


def nnconv_reference(x, efeat, src, dst, num_nodes, w_ef, b_ef, bias,
                     in_feats, out_feats):
    W = (efeat @ w_ef + b_ef).reshape(-1, in_feats, out_feats)        # [E, IN, OUT]
    msg = jnp.einsum('ei,eio->eo', x[src], W)                         # [E, OUT]
    deg = jnp.zeros((num_nodes,), jnp.float32).at[dst].add(1.0)
    neigh = jnp.zeros((num_nodes, out_feats), jnp.float32).at[dst].add(msg)
    neigh = neigh / jnp.maximum(deg, 1.0)[:, None]
    return neigh + bias


if __name__ == "__main__":
    key = jax.random.PRNGKey(0)
    N = 24                       # nodes  -> 3 node tiles of 8
    IN, OUT, DE = 4, 8, 6        # in_feats, out_feats, edge-feature dim
    TILE_N, TILE_E = 8, 128

    k1, k2, k3, k4, k5, k6 = jax.random.split(key, 6)
    x = jax.random.normal(k1, (N, IN), jnp.float32)

    # Graph chosen to exercise all kernel paths:
    #   node tile 0 (nodes 0..7)  : 200 incoming edges -> 2 edge tiles (accumulate path)
    #   node tile 1 (nodes 8..15) : 40 edges, only onto nodes 8..12 (isolated nodes too)
    #   node tile 2 (nodes 16..23): no incoming edges (dummy edge tile, bias-only output)
    dst0 = jax.random.randint(k3, (200,), 0, 8, dtype=jnp.int32)
    dst1 = jax.random.randint(k4, (40,), 8, 13, dtype=jnp.int32)
    dst = jnp.concatenate([dst0, dst1])
    E = dst.shape[0]
    src = jax.random.randint(k5, (E,), 0, N, dtype=jnp.int32)
    efeat = jax.random.normal(k2, (E, DE), jnp.float32)

    # edge_func = nn.Linear(DE, IN*OUT); deterministic synthetic init
    w_ef = jax.random.normal(k6, (DE, IN * OUT), jnp.float32) * 0.1
    b_ef = jnp.linspace(-0.1, 0.1, IN * OUT, dtype=jnp.float32)
    # NNConv bias: reset_parameters() zero-initializes it
    bias = jnp.zeros((OUT,), jnp.float32)

    out = nnconv_forward(x, efeat, src, dst, N, w_ef, b_ef, bias, OUT,
                         tile_n=TILE_N, tile_e=TILE_E)
    out = jax.block_until_ready(out)

    ref = nnconv_reference(x, efeat, src, dst, N, w_ef, b_ef, bias, IN, OUT)
    assert out.shape == (N, OUT)
    # bf16 MXU inputs with f32 accumulation + exact f32 mean scaling -> bf16-level tol.
    assert jnp.allclose(out, ref, atol=2e-2, rtol=2e-2), (
        float(jnp.max(jnp.abs(out - ref))))

    print("KERNEL_OK")
</pallas_src>

<mosaic_0001>
module attributes {stable_mosaic.version = 11 : i64} {
  func.func @nnconv_kernel(%arg0: i32, %arg1: memref<4xi32, #tpu.memory_space<smem>>, %arg2: memref<4xi32, #tpu.memory_space<smem>>, %arg3: memref<4xi32, #tpu.memory_space<smem>>, %arg4: memref<128x28xbf16, #tpu.memory_space<vmem>>, %arg5: memref<28x128xbf16, #tpu.memory_space<vmem>>, %arg6: memref<1x128xi32, #tpu.memory_space<vmem>>, %arg7: memref<8x1xf32, #tpu.memory_space<vmem>>, %arg8: memref<1x128xf32, #tpu.memory_space<vmem>>, %arg9: memref<8x128xf32, #tpu.memory_space<vmem>>) attributes {dimension_semantics = [#tpu.dimension_semantics<arbitrary>], iteration_bounds = array<i64: 4>, scalar_prefetch = 3 : i64, scratch_operands = 0 : i64, tpu.core_type = #tpu.core_type<tc>, window_params = [{transform_indices = @transform_0, window_bounds = array<i64: 128, 28>}, {pipeline_mode = #tpu.pipeline_mode<synchronous>, transform_indices = @transform_1, window_bounds = array<i64: 28, 128>}, {transform_indices = @transform_2, window_bounds = array<i64: 1, 128>}, {transform_indices = @transform_3, window_bounds = array<i64: 8, 1>}, {pipeline_mode = #tpu.pipeline_mode<synchronous>, transform_indices = @transform_4, window_bounds = array<i64: 1, 128>}, {transform_indices = @transform_5, window_bounds = array<i64: 8, 128>}]} {
    %c0 = arith.constant 0 : index
    %c0_0 = arith.constant 0 : index
    %0 = vector.load %arg4[%c0, %c0_0] : memref<128x28xbf16, #tpu.memory_space<vmem>>, vector<128x28xbf16>
    %c0_1 = arith.constant 0 : index
    %c0_2 = arith.constant 0 : index
    %1 = vector.load %arg5[%c0_1, %c0_2] : memref<28x128xbf16, #tpu.memory_space<vmem>>, vector<28x128xbf16>
    %cst = arith.constant dense<0.000000e+00> : vector<128x128xf32>
    %2 = tpu.matmul %0, %1, %cst {dimension_numbers = #tpu.dot_dimension_numbers<[1], [0], [0], [1], [0, 0, 1, 1], [], []>} : vector<128x28xbf16>, vector<28x128xbf16>, vector<128x128xf32> -> vector<128x128xf32>
    %3 = tpu.iota {dimensions = array<i32: 0>} : vector<8x128xi32>
    %c0_3 = arith.constant 0 : index
    %c0_4 = arith.constant 0 : index
    %4 = vector.load %arg6[%c0_3, %c0_4] : memref<1x128xi32, #tpu.memory_space<vmem>>, vector<1x128xi32>
    %5 = vector.broadcast %4 : vector<1x128xi32> to vector<8x128xi32>
    %6 = arith.cmpi eq, %3, %5 : vector<8x128xi32>
    %7 = arith.extui %6 : vector<8x128xi1> to vector<8x128xi32>
    %8 = arith.sitofp %7 : vector<8x128xi32> to vector<8x128xf32>
    %9 = arith.truncf %8 : vector<8x128xf32> to vector<8x128xbf16>
    %10 = arith.truncf %2 : vector<128x128xf32> to vector<128x128xbf16>
    %cst_5 = arith.constant dense<0.000000e+00> : vector<8x128xf32>
    %11 = tpu.matmul %9, %10, %cst_5 {dimension_numbers = #tpu.dot_dimension_numbers<[1], [0], [0], [1], [0, 0, 1, 1], [], []>} : vector<8x128xbf16>, vector<128x128xbf16>, vector<8x128xf32> -> vector<8x128xf32>
    %12 = arith.index_cast %arg0 : i32 to index
    %13 = memref.load %arg2[%12] : memref<4xi32, #tpu.memory_space<smem>>
    %14 = arith.index_cast %arg0 : i32 to index
    %15 = memref.load %arg3[%14] : memref<4xi32, #tpu.memory_space<smem>>
    %c1_i32 = arith.constant 1 : i32
    %16 = arith.cmpi eq, %13, %c1_i32 : i32
    %17 = arith.extui %16 : i1 to i32
    %c0_i32 = arith.constant 0 : i32
    %18 = arith.cmpi ne, %17, %c0_i32 : i32
    scf.if %18 {
      %c0_10 = arith.constant 0 : index
      %c0_11 = arith.constant 0 : index
      %25 = vector.load %arg9[%c0_10, %c0_11] : memref<8x128xf32, #tpu.memory_space<vmem>>, vector<8x128xf32>
      tpu.vector_store %arg9[%c0_10, %c0_11], %11 {strides = array<i32>} : memref<8x128xf32, #tpu.memory_space<vmem>>, vector<8x128xf32>,
    } else {
    }
    %c0_i32_6 = arith.constant 0 : i32
    %19 = arith.cmpi eq, %13, %c0_i32_6 : i32
    %20 = arith.extui %19 : i1 to i32
    %c0_i32_7 = arith.constant 0 : i32
    %21 = arith.cmpi ne, %20, %c0_i32_7 : i32
    scf.if %21 {
      %c0_10 = arith.constant 0 : index
      %c0_11 = arith.constant 0 : index
      %25 = vector.load %arg9[%c0_10, %c0_11] : memref<8x128xf32, #tpu.memory_space<vmem>>, vector<8x128xf32>
      %26 = arith.addf %25, %11 : vector<8x128xf32>
      %c0_12 = arith.constant 0 : index
      %c0_13 = arith.constant 0 : index
      %27 = vector.load %arg9[%c0_12, %c0_13] : memref<8x128xf32, #tpu.memory_space<vmem>>, vector<8x128xf32>
      tpu.vector_store %arg9[%c0_12, %c0_13], %26 {strides = array<i32>} : memref<8x128xf32, #tpu.memory_space<vmem>>, vector<8x128xf32>,
    } else {
    }
    %c1_i32_8 = arith.constant 1 : i32
    %22 = arith.cmpi eq, %15, %c1_i32_8 : i32
    %23 = arith.extui %22 : i1 to i32
    %c0_i32_9 = arith.constant 0 : i32
    %24 = arith.cmpi ne, %23, %c0_i32_9 : i32
    scf.if %24 {
      %c0_10 = arith.constant 0 : index
      %c0_11 = arith.constant 0 : index
      %25 = vector.load %arg9[%c0_10, %c0_11] : memref<8x128xf32, #tpu.memory_space<vmem>>, vector<8x128xf32>
      %c0_12 = arith.constant 0 : index
      %c0_13 = arith.constant 0 : index
      %26 = vector.load %arg7[%c0_12, %c0_13] : memref<8x1xf32, #tpu.memory_space<vmem>>, vector<8x1xf32>
      %27 = vector.broadcast %26 : vector<8x1xf32> to vector<8x128xf32>
      %28 = arith.mulf %25, %27 : vector<8x128xf32>
      %c0_14 = arith.constant 0 : index
      %c0_15 = arith.constant 0 : index
      %29 = vector.load %arg8[%c0_14, %c0_15] : memref<1x128xf32, #tpu.memory_space<vmem>>, vector<1x128xf32>
      %30 = vector.broadcast %29 : vector<1x128xf32> to vector<8x128xf32>
      %31 = arith.addf %28, %30 : vector<8x128xf32>
      %c0_16 = arith.constant 0 : index
      %c0_17 = arith.constant 0 : index
      %32 = vector.load %arg9[%c0_16, %c0_17] : memref<8x128xf32, #tpu.memory_space<vmem>>, vector<8x128xf32>
      tpu.vector_store %arg9[%c0_16, %c0_17], %31 {strides = array<i32>} : memref<8x128xf32, #tpu.memory_space<vmem>>, vector<8x128xf32>,
    } else {
    }
    return
  }
  func.func @transform_0(%arg0: i32, %arg1: memref<4xi32, #tpu.memory_space<smem>>, %arg2: memref<4xi32, #tpu.memory_space<smem>>, %arg3: memref<4xi32, #tpu.memory_space<smem>>) -> (i32, i32) {
    %c0_i32 = arith.constant 0 : i32
    %c0_i32_0 = arith.constant 0 : i32
    return %arg0, %c0_i32 : i32, i32
  }
  func.func @transform_1(%arg0: i32, %arg1: memref<4xi32, #tpu.memory_space<smem>>, %arg2: memref<4xi32, #tpu.memory_space<smem>>, %arg3: memref<4xi32, #tpu.memory_space<smem>>) -> (i32, i32) {
    %c0_i32 = arith.constant 0 : i32
    %c0_i32_0 = arith.constant 0 : i32
    %c0_i32_1 = arith.constant 0 : i32
    return %c0_i32, %c0_i32_0 : i32, i32
  }
  func.func @transform_2(%arg0: i32, %arg1: memref<4xi32, #tpu.memory_space<smem>>, %arg2: memref<4xi32, #tpu.memory_space<smem>>, %arg3: memref<4xi32, #tpu.memory_space<smem>>) -> (i32, i32) {
    %c0_i32 = arith.constant 0 : i32
    %c0_i32_0 = arith.constant 0 : i32
    return %c0_i32, %arg0 : i32, i32
  }
  func.func @transform_3(%arg0: i32, %arg1: memref<4xi32, #tpu.memory_space<smem>>, %arg2: memref<4xi32, #tpu.memory_space<smem>>, %arg3: memref<4xi32, #tpu.memory_space<smem>>) -> (i32, i32) {
    %0 = arith.index_cast %arg0 : i32 to index
    %1 = memref.load %arg1[%0] : memref<4xi32, #tpu.memory_space<smem>>
    %c0_i32 = arith.constant 0 : i32
    %c0_i32_0 = arith.constant 0 : i32
    return %1, %c0_i32 : i32, i32
  }
  func.func @transform_4(%arg0: i32, %arg1: memref<4xi32, #tpu.memory_space<smem>>, %arg2: memref<4xi32, #tpu.memory_space<smem>>, %arg3: memref<4xi32, #tpu.memory_space<smem>>) -> (i32, i32) {
    %c0_i32 = arith.constant 0 : i32
    %c0_i32_0 = arith.constant 0 : i32
    %c0_i32_1 = arith.constant 0 : i32
    return %c0_i32, %c0_i32_0 : i32, i32
  }
  func.func @transform_5(%arg0: i32, %arg1: memref<4xi32, #tpu.memory_space<smem>>, %arg2: memref<4xi32, #tpu.memory_space<smem>>, %arg3: memref<4xi32, #tpu.memory_space<smem>>) -> (i32, i32) {
    %0 = arith.index_cast %arg0 : i32 to index
    %1 = memref.load %arg1[%0] : memref<4xi32, #tpu.memory_space<smem>>
    %c0_i32 = arith.constant 0 : i32
    %c0_i32_0 = arith.constant 0 : i32
    return %1, %c0_i32 : i32, i32
  }
}

</mosaic_0001>

<bundles_post_ra>
// kernel: tpu_custom_call.1
= control target key start
LH: loop header
LB: loop body
LE: loop exit
PB: predicated region body
PF: predicated region fallthrough
CT: control target
= control target key end

     0   :  { %s826_s11 = smov [#allocation3]   ;;  %s827_s12 = smov [#allocation4]   ;;  %s1030_s0 = inlined_call_operand.vmem [shape: s32[4], index: 0, kind: input, shape index: {}]   ;;  %s1031_s3 = inlined_call_operand.vmem [shape: bf16[512,28], index: 3, kind: input, shape index: {}]   ;;  %s1032_s4 = inlined_call_operand.vmem [shape: bf16[28,128], index: 4, kind: input, shape index: {}]   ;;  %s1033_s5 = inlined_call_operand.vmem [shape: s32[1,512], index: 5, kind: input, shape index: {}]   ;;  %s1034_s6 = inlined_call_operand.vmem [shape: f32[24,1], index: 6, kind: input, shape index: {}]   ;;  %s1035_s7 = inlined_call_operand.vmem [shape: f32[1,128], index: 7, kind: input, shape index: {}]   ;;  %s1036_s8 = inlined_call_operand.hbm [shape: f32[24,128], index: 8, kind: output, shape index: {}]   ;;  %s1037_s1 = inlined_call_operand.vmem [shape: s32[4], index: 1, kind: input, shape index: {}]   ;;  %s1038_s2 = inlined_call_operand.vmem [shape: s32[4], index: 2, kind: input, shape index: {}]  }
   0x1   :  { %s14_s29 = sshll.u32 %s1030_s0, 4  ;;  %s19_s10 = sshll.u32 %s1037_s1, 4  ;;  %s15_s29 = int_to_ptr.vmem [resolvable:$true] %s14_s29  ;;  %s20_s10 = int_to_ptr.vmem [resolvable:$true] %s19_s10 }
   0x2   :  { %17 = dma.vmem_to_smem %s15_s29, 16, %s826_s11, [#allocation2] }
   0x3   :  { %22 = dma.vmem_to_smem %s20_s10, 16, %s827_s12, [#allocation2] }
   0x4   :  { %s24_s15 = sshll.u32 %s1038_s2, 4  ;;  %s828_s16 = smov [#allocation5]   ;;  %s25_s15 = int_to_ptr.vmem [resolvable:$true] %s24_s15 }
   0x5   :  { %27 = dma.vmem_to_smem %s25_s15, 16, %s828_s16, [#allocation2] }
   0x6   :  { %804 = dma.done.wait [#allocation2], 48 }
   0x7   :  { %805 = vsyncadd [#allocation2], 4294967248 }
   0x8   :  { %30 = sfence }
   0x9   :  { %31 = vsyncpa [#allocation7], 0 }
   0xa   :  { %33 = vsyncpa [#allocation7 + $0x1], 0  ;;  %s885_s0 = smov 0   ;;  %s887_s1 = smov 0  }
   0xb   :  { %s889_s17 = smov 0   ;;  %s891_s18 = smov 0  }
   0xc LB: > { %s906_s2 = sadd.s32 4294967295, %s824_s18   ;;  %s595_s19 = sadd.s32 4294967294, %s824_s18   ;;  %s824_s18 = sphi %s891_s18, %s1044_s18   ;;  %s820_s17 = sphi %s889_s17, %s1043_s17   ;;  %s816_s1 = sphi %s887_s1, %s1042_s1   ;;  %s812_s0 = sphi %s885_s0, %s1041_s0  }
   0xd   : > { %s910_s20 = sadd.s32 1, %s824_s18   ;;  %s165_s21 = sld [smem:[#allocation3 + %s824_s18]] }
   0xe   : > { %s166_s22 = sld [smem:[#allocation3 + %s910_s20]]  ;;  %p180_p0 = scmp.ne.s32.totalorder %s820_s17, %s816_s1 }
   0xf   : > { %p181_p1 = scmp.eq.s32.totalorder %s906_s2, 3  ;;  %p186_p2 = scmp.ne.s32.totalorder %s816_s1, %s812_s0 }
  0x10   : > { %p187_p3 = scmp.eq.s32.totalorder %s595_s19, 3  ;;  %p598_p5 = scmp.ge.s32.totalorder %s824_s18, 1 }
  0x11   : > { %p919_p4 = por %p181_p1, %p180_p0  ;;  %p235_p7 = scmp.lt.s32.totalorder %s824_s18, 5 }
  0x12   : > { %p924_p6 = por %p187_p3, %p186_p2  ;;  %s170_s25 = sadd.s32 1, %s820_s17 }
  0x13   : > { %p236_p8 = pnand %p598_p5, %p235_p7 }
  0x14   : > { %s167_s26 = ssub.s32 %s165_s21, %s166_s22  ;;  %s600_s10 = sshll.u32 (!%p236_p8), %s906_s2, 4 }
  0x15   : > { %p168_p9 = scmp.eq.s32.totalorder %s167_s26, 0  ;;  %239 = sbr.rel (%p236_p8) target bundleno = 532 (0x214), region = 40 }
  0x16   : > { %s268_s11 = sand.u32 (!%p236_p8), 1, %s816_s1   ;;  %p272_p10 = scmp.lt.s32.totalorder (!%p236_p8), %s600_s10, 63 }
  0x17   : > { %s931_s27 = scalar_select %p168_p9, %s820_s17, %s170_s25  }
  0x18   : > { %s943_s12 = sshll.u32 (!%p236_p8), %s268_s11, 3  ;;  %s280_s13 = sld [smem:[#allocation3 + %s906_s2]] (!%p236_p8) }
  0x19   : > { %p277_p12 = scmp.lt.s32.totalorder (!%p236_p8), %s906_s2, 3  ;;  %s467_s19 = sld [smem:[#allocation5 + %s906_s2]] (!%p236_p8) }
  0x1a   : > { %v641_v0 = vld [vmem:[%s1032_s4 + $0x8] sm:$0xf]  ;;  %v670_v1 = vld [vmem:[%s1032_s4 + $0x8] sm:$0x30]  ;;  %vm384_vm0 = vcmask 1045504   ;;  %v669_v4 = vld [vmem:[%s1032_s4] sm:$0xff]  ;;  %v437_v34 = vlaneseq }
  0x1b   : > { %v642_v2 = vor.u32 %v670_v1, %v641_v0  ;;  %s1046_s10 = smov (!%p272_p10, %s600_s10), 63  ;;  %vm359_vm1 = vcmask 228352   ;;  %v829_v40 = vmov 1.0|1.0   ;;  %s981_s21 = scalar_lea.vmem [#allocation6], %s943_s12 }
  0x1c   : > { %s601_s16 = sshll.u32 %s1046_s10, 2  ;;  %v438_v36 = vshrl.u32 %v437_v34, 7 }
  0x1d   : > { %v386_v3 = vsel %vm384_vm0, %v642_v2, 0  ;;  %s275_s22 = scalar_lea.vmem %s1031_s3, %s601_s16  ;;  %s466_s16 = sld [smem:[#allocation4 + %s906_s2]] }
  0x1e   : > { %671 = vmatpush.bf16.msra.mxu2 %v386_v3  ;;  %672 = vmatpush.bf16.msra.mxu3 %v386_v3  ;;  %v664_v5 = vld [vmem:[%s275_s22 + $0x18] sm:$0xff]  ;;  %v667_v6 = vld [vmem:[%s275_s22 + $0x30] sm:$0xff]  ;;  %v661_v7 = vld [vmem:[%s275_s22] sm:$0xff]  ;;  %p281_p11 = scmp.lt.s32.totalorder %s280_s13, 2 }
  0x1f   : > { %394 = vmatpush.bf16.msra.mxu0 %v386_v3  ;;  %v665_v8 = vld [vmem:[%s275_s22 + $0x20] sm:$0xff]  ;;  %v668_v9 = vld [vmem:[%s275_s22 + $0x38] sm:$0xff]  ;;  %v662_v10 = vld [vmem:[%s275_s22 + $0x8] sm:$0xff]  ;;  %s967_s30 = scalar_select %p277_p12, %s906_s2, 3 }
  0x20   : > { %s1048_s13 = smov (!%p281_p11, %s280_s13), 2  ;;  %v666_v11 = vld [vmem:[%s275_s22 + $0x28] sm:$0xff]  ;;  %v663_v12 = vld [vmem:[%s275_s22 + $0x10] sm:$0xff] }
  0x21   : > { %s602_s25 = sshll.u32 %s1048_s13, 3  ;;  %s279_s13 = scalar_lea.vmem %s1033_s5, %s967_s30 }
  0x22   : > { %673 = vmatpush.bf16.msra.mxu2 %v669_v4  ;;  %674 = vmatpush.bf16.msra.mxu3 %v669_v4  ;;  %s958_s29 = scalar_lea.vmem %s1034_s6, %s602_s25  ;;  %v721_v37 = vld [vmem:[%s279_s13] ss:$0 sm:$0xff] }
  0x23   : > { %395 = vmatpush.bf16.msra.mxu0 %v669_v4  ;;  %vm441_vm2 = vcmp.eq.s32.totalorder %v438_v36, %v721_v37  ;;  %p654_p13 = scmp.ne.s32.totalorder %s466_s16, 1 }
  0x24   : > { %vm652_vm3 = vmpackc.low %vm441_vm2, %vm441_vm2 }
  0x25   : > { %646 = vmatmul.msk.bf16.vlgmr.msra.gmra.mxu2 %vm359_vm1, %v664_v5  ;;  %649 = vmatmul.msk.bf16.vlgmr.msra.gmra.mxu3 %vm359_vm1, %v667_v6 }
  0x26   : > { %643 = vmatmul.msk.bf16.vlgmr.msra.gmra.mxu0 %vm359_vm1, %v661_v7 }
  0x35   : > { %647 = vmatmul.msk.bf16.gmra.mxu2 %vm359_vm1, %v665_v8  ;;  %650 = vmatmul.msk.bf16.gmra.mxu3 %vm359_vm1, %v668_v9 }
  0x36   : > { %644 = vmatmul.msk.bf16.gmra.mxu0 %vm359_vm1, %v662_v10 }
  0x45   : > { %648 = vmatmul.msk.bf16.gmra.mxu2 %vm359_vm1, %v666_v11 }
  0x46   : > { %645 = vmatmul.msk.bf16.gmra.mxu0 %vm359_vm1, %v663_v12 }
  0xa3   : > { %v397_v13 = vpop.f32.mrf.mxu0 }
  0xa8   : > { %v412_v14 = vpop.f32.mrf.mxu2  ;;  %v427_v15 = vpop.f32.mrf.mxu3 }
  0xab   : > { %v399_v18 = vpop.f32.mrf.mxu0 }
  0xac   : > { %v445_v39 = vpack.c.bf16 %v399_v18, %v397_v13 }
  0xb0   : > { %v414_v16 = vpop.f32.mrf.mxu2  ;;  %v429_v17 = vpop.f32.mrf.mxu3 }
  0xb1   : > { %v451_v25 = vpack.c.bf16 %v429_v17, %v427_v15  ;;  %v448_v32 = vpack.c.bf16 %v414_v16, %v412_v14 }
  0xb3   : > { %v402_v21 = vpop.f32.mrf.mxu0 }
  0xb8   : > { %v417_v19 = vpop.f32.mrf.mxu2  ;;  %v432_v20 = vpop.f32.mrf.mxu3 }
  0xbb   : > { %v404_v26 = vpop.f32.mrf.mxu0 }
  0xbc   : > { %v446_v38 = vpack.c.bf16 %v404_v26, %v402_v21 }
  0xc0   : > { %v419_v22 = vpop.f32.mrf.mxu2  ;;  %v434_v23 = vpop.f32.mrf.mxu3 }
  0xc1   : > { %v452_v24 = vpack.c.bf16 %v434_v23, %v432_v20  ;;  %v449_v31 = vpack.c.bf16 %v419_v22, %v417_v19 }
  0xc3   : > { %453 = vmatpush.bf16.msra.mxu1 %v452_v24  ;;  %v407_v28 = vpop.f32.mrf.mxu0 }
  0xc7   : > { %454 = vmatpush.bf16.msra.mxu1 %v451_v25 }
  0xc8   : > { %v422_v27 = vpop.f32.mrf.mxu2 }
  0xcb   : > { %v409_v33 = vpop.f32.mrf.mxu0 }
  0xcc   : > { %v447_v35 = vpack.c.bf16 %v409_v33, %v407_v28 }
  0xd0   : > { %v424_v29 = vpop.f32.mrf.mxu2 }
  0xd1   : > { %v450_v30 = vpack.c.bf16 %v424_v29, %v422_v27 }
  0xd3   : > { %455 = vmatpush.bf16.msra.mxu1 %v450_v30 }
  0xd7   : > { %456 = vmatpush.bf16.msra.mxu1 %v449_v31 }
  0xdb   : > { %457 = vmatpush.bf16.msra.mxu1 %v448_v32 }
  0xdf   : > { %458 = vmatpush.bf16.msra.mxu1 %v447_v35 }
  0xe3   : > { %459 = vmatpush.bf16.msra.mxu1 %v446_v38 }
  0xe7   : > { %460 = vmatpush.bf16.msra.mxu1 %v445_v39 }
  0xea   : > { %653 = vmatmul.msk.bf16.vlgmr.msra.gmra.mxu1 %vm652_vm3, %v829_v40 }
 0x167   : > { %v462_v41 = vpop.f32.mrf.mxu1 }
 0x16b   : > { %471 = sbr.rel (%p654_p13) target bundleno = 369 (0x171), region = 44 }
 0x16f   : > { %v464_v42 = vpop.f32.mrf.mxu1 }
 0x170   : > { %472 = vst [vmem:[%s981_s21] sm:$0xff] %v462_v41 }
 0x171 PF: > { %p655_p0 = scmp.ne.s32.totalorder %s466_s16, 0 }
 0x173   : > { %476 = sbr.rel (%p655_p0) target bundleno = 380 (0x17c), region = 48 }
 0x178   : > { %v477_v43 = vld [vmem:[%s981_s21] sm:$0xff] }
 0x179   : > { %v478_v44 = vadd.f32 %v477_v43, %v462_v41 }
 0x17b   : > { %479 = vst [vmem:[%s981_s21] sm:$0xff] %v478_v44 }
 0x17c PF: > { %p656_p1 = scmp.ne.s32.totalorder %s467_s19, 1 }
 0x17e   : > { %483 = sbr.rel (%p656_p1) target bundleno = 509 (0x1fd), region = 52 }
 0x183   : > { %v485_v45 = vld [vmem:[%s958_s29] sm:$0xff]  ;;  %v830_v46 = vmov 0  }
 0x184   : > { %722 = vset.pattern.permute.xlu0 %v830_v46  ;;  %v484_v47 = vld [vmem:[%s981_s21] sm:$0xff] }
 0x185   : > { %488 = vperm.xlu0 %722, %v485_v45   ;;  %v723_v48 = vld [vmem:[%s1035_s7] ss:$0 sm:$0xff] }
 0x1f7   : > { %v489_v49 = vpop.permute.xlu0 %488 }
 0x1f8   : > { %v491_v50 = vmul.f32 %v489_v49, %v484_v47 }
 0x1fa   : > { %v496_v51 = vadd.f32 %v723_v48, %v491_v50 }
 0x1fc   : > { %497 = vst [vmem:[%s981_s21] sm:$0xff] %v496_v51 }
 0x1fd PF: > { %s675_s25 = scalar_select %p919_p4, [#allocation3], [#allocation8] }
 0x1fe   : > { %s1050_s2 = smov (!%p919_p4, %s906_s2), 0  ;;  %s512_s28 = sshll.u32 %s981_s21, 4  ;;  %s513_s28 = int_to_ptr.vmem [resolvable:$true] %s512_s28 }
 0x1ff   : > { %s506_s26 = sld [smem:[%s675_s25 + %s1050_s2]]  ;;  %s499_s14 = scalar_lea.sflag [#allocation7], %s268_s11 }
 0x200   : > { %s780_s21 = scalar_lea.hbm %s1036_s8, 24 }
 0x205   : > { %s658_s29 = sshll.u32 %s506_s26, 3 }
 0x206   : > { %s510_s10 = scalar_lea.hbm %s1036_s8, %s658_s29 }
 0x207   : > { %s514_s13 = sshll.u32 %s510_s10, 4  ;;  %s515_s13 = int_to_ptr.hbm [resolvable:$true] %s514_s13 }
 0x208   : > { %s774_s15 = sshra.s32 %s515_s13, 4  ;;  %s775_s15 = int_to_ptr.hbm [resolvable:$true] %s774_s15 }
 0x209   : > { %s776_s16 = scalar_lea.hbm %s775_s15, 8  ;;  %p781_p7 = scmp.lt.s32.totalorder %s775_s15, %s1036_s8 }
 0x20a   : > { %p777_p2 = scmp.ne.s32.totalorder %s775_s15, %s776_s16  ;;  %p782_p8 = scmp.lt.s32.totalorder %s780_s21, %s776_s16 }
 0x20c   : > { %p778_p3 = pnand %p777_p2, %p919_p4  ;;  %p783_p9 = por %p782_p8, %p781_p7 }
 0x20e   : > { %p779_p5 = pneg %p778_p3 }
 0x210   : > { %p784_p10 = pnand %p783_p9, %p779_p5 }
 0x212   : > { %787 = shalt.err (!%p784_p10)
}
 0x213   : > { %677 = dma.vmem_to_hbm [thread:$0]  (%p919_p4), %s513_s28, 128, %s515_s13, %s499_s14  }
 0x214 PF: > { %p683_p11 = scmp.ge.s32.totalorder %s824_s18, 2  ;;  %s526_s11 = sand.u32 1, %s812_s0  }
 0x215   : > { %s527_s25 = scalar_lea.sflag [#allocation7], %s526_s11 }
 0x216   : > { %p680_p12 = pnand %p683_p11, %p924_p6 }
 0x218   : > { %p681_p13 = pneg %p680_p12 }
 0x21a   : > { %807 = dma.done.wait (%p681_p13), %s527_s25, 128  }
 0x21b   : > { %809 = vsyncadd (%p681_p13), %s527_s25, 4294967168  ;;  %p36_p0 = scmp.ge.s32.totalorder %s910_s20, 6   ;;  %s1041_s0 = smov %s816_s1 }
 0x21c   : > { %s1042_s1 = smov %s820_s17  ;;  %s1043_s17 = smov %s931_s27 }
 0x21d   : > { %s1044_s18 = smov %s910_s20  ;;  %38 = sbr.rel (!%p36_p0) target bundleno = 12 (0xc), region = 93 }
 0x222   :  { %533 = vsyncpa [#allocation7], 1 }
 0x223   :  { %535 = vsyncpa [#allocation7 + $0x1], 1 }

</bundles_post_ra>
